<compile_context>
chip_gen: v5e
topology: v5e:2x2
jax: 0.10.0
libtpu: 0.0.40
codegen_flags: <defaults>
</compile_context>

<pallas_src>
import functools

import jax
import jax.numpy as jnp
from jax.experimental import pallas as pl
from jax.experimental.pallas import tpu as pltpu


# ---------------------------------------------------------------------------
# VMEM budgeting helpers
# ---------------------------------------------------------------------------
def _vmem_physical_bytes():
    """Physical VMEM per TensorCore; conservative (v7x) fallback."""
    try:
        cap = int(pltpu.get_tpu_info().vmem_capacity_bytes)
        if cap > 0:
            return cap
    except Exception:
        pass
    return 64 << 20


def _pick_hw_tile(hw, c, itemsize, budget_bytes):
    """HW tile for the two-pass path.

    Returns the full extent when it fits the budget (always a legal block), else
    the largest multiple of 128 lanes that fits; the remainder is lane-masked.
    """
    max_lanes = max(128, ((budget_bytes // max(1, c * itemsize)) // 128) * 128)
    if hw <= max_lanes:
        return hw
    return max_lanes


# ---------------------------------------------------------------------------
# Fused single-pass kernel: pool + cSE gate + sSE gate + combine
# ---------------------------------------------------------------------------
def _scse_fused_kernel(x_ref, w1_ref, b1_ref, w2_ref, b2_ref, ws_ref, bs_ref,
                       o_ref, *, inv_hw):
    x = x_ref[0]                                            # (C, HW), I/O dtype

    # Global average pool (f32 accumulation).
    mean = jnp.sum(x.astype(jnp.float32), axis=1, keepdims=True) * inv_hw  # (C, 1)

    # cSE: 1x1 conv -> ReLU -> 1x1 conv -> sigmoid (tiny, f32).
    h = jnp.dot(w1_ref[...], mean, preferred_element_type=jnp.float32) + b1_ref[...]
    h = jnp.maximum(h, 0.0)
    cse = jax.nn.sigmoid(
        jnp.dot(w2_ref[...], h, preferred_element_type=jnp.float32) + b2_ref[...])  # (C, 1)

    # sSE: per-pixel C->1 reduction on the MXU: (1, C) @ (C, HW).
    sse = jax.nn.sigmoid(
        jnp.dot(ws_ref[...].astype(x.dtype), x, preferred_element_type=jnp.float32)
        + bs_ref[0, 0])                                     # (1, HW) f32

    # Combine in the I/O dtype (bf16 VALU on v6e/v7x; exact for f32).
    o_ref[0] = (x * (cse.astype(x.dtype) + sse.astype(x.dtype))).astype(o_ref.dtype)


# ---------------------------------------------------------------------------
# Two-pass path, pass 1: per-(N, C) sums over HW tiles
# ---------------------------------------------------------------------------
def _pool_sum_kernel(x_ref, sum_ref, *, hw, hw_tile, needs_mask):
    t = pl.program_id(1)

    @pl.when(t == 0)
    def _init():
        sum_ref[...] = jnp.zeros_like(sum_ref)

    x = x_ref[0].astype(jnp.float32)                        # (C, hw_tile)
    if needs_mask:
        lane = jax.lax.broadcasted_iota(jnp.int32, x.shape, 1)
        x = jnp.where(t * hw_tile + lane < hw, x, 0.0)
    sum_ref[0] += jnp.sum(x, axis=1, keepdims=True)         # (C, 1)


# ---------------------------------------------------------------------------
# Two-pass path, pass 2: sSE gate + combine  out = x * (cSE + sSE)
# ---------------------------------------------------------------------------
def _scse_apply_kernel(x_ref, gate_ref, ws_ref, bs_ref, o_ref):
    x = x_ref[0]                                            # (C, hw_tile), I/O dtype
    cse = gate_ref[0]                                       # (C, 1) f32, precomputed

    # sSE channel reduction on the MXU (idle slot in this kernel).
    sse = jax.nn.sigmoid(
        jnp.dot(ws_ref[...].astype(x.dtype), x, preferred_element_type=jnp.float32)
        + bs_ref[0, 0])                                     # (1, hw_tile) f32

    o_ref[0] = (x * (cse.astype(x.dtype) + sse.astype(x.dtype))).astype(o_ref.dtype)


# ---------------------------------------------------------------------------
# Wrapper
# ---------------------------------------------------------------------------
def scse_pallas(x_nchw, w1t, b1, w2t, b2, ws, bs, *,
                hw_tile=None, force_two_pass=False):
    """scSE forward. Weights:
         w1t: (C//r, C)  b1: (C//r, 1)   -- cSE conv1 (out, in)
         w2t: (C, C//r)  b2: (C, 1)      -- cSE conv2 (out, in)
         ws : (C, 1)     bs: (1, 1)      -- sSE conv
    """
    N, C, H, W = x_nchw.shape
    HW = H * W
    Cr = w1t.shape[0]
    dt = x_nchw.dtype
    itemsize = dt.itemsize

    # Free (contiguous) reshape: NCHW -> (N, C, HW). No transposes.
    x = x_nchw.reshape(N, C, HW)
    ws_row = ws.reshape(1, C)            # sSE weight as a row for the MXU matvec
    bs2 = bs.reshape(1, 1)

    phys = _vmem_physical_bytes()
    vmem_limit = min((phys * 3) // 4, 100 << 20)

    # ---- fused single-pass dispatch --------------------------------------
    slab_bytes = C * HW * itemsize
    # x in + out, double-buffered, plus ~2 f32-slab in-kernel temporaries.
    fused_footprint = 4 * slab_bytes + 2 * C * HW * 4 + (1 << 20)

    if (not force_two_pass) and fused_footprint <= vmem_limit:
        cost = pl.CostEstimate(
            flops=int(5 * N * C * HW),
            transcendentals=int(N * (HW + C + Cr)),
            bytes_accessed=int(2 * N * C * HW * itemsize))
        out = pl.pallas_call(
            functools.partial(_scse_fused_kernel, inv_hw=1.0 / HW),
            out_shape=jax.ShapeDtypeStruct((N, C, HW), dt),
            grid_spec=pltpu.PrefetchScalarGridSpec(
                num_scalar_prefetch=0,
                grid=(N,),
                in_specs=[
                    pl.BlockSpec((1, C, HW), lambda n: (n, 0, 0)),   # x
                    pl.BlockSpec((Cr, C), lambda n: (0, 0)),          # w1t
                    pl.BlockSpec((Cr, 1), lambda n: (0, 0)),          # b1
                    pl.BlockSpec((C, Cr), lambda n: (0, 0)),          # w2t
                    pl.BlockSpec((C, 1), lambda n: (0, 0)),           # b2
                    pl.BlockSpec((1, C), lambda n: (0, 0)),           # ws (row)
                    pl.BlockSpec(memory_space=pltpu.MemorySpace.SMEM),  # bs scalar
                ],
                out_specs=pl.BlockSpec((1, C, HW), lambda n: (n, 0, 0)),
            ),
            compiler_params=pltpu.CompilerParams(
                dimension_semantics=("parallel",),
                vmem_limit_bytes=vmem_limit),
            cost_estimate=cost,
        )(x, w1t, b1, w2t, b2, ws_row, bs2)
        return out.reshape(N, C, H, W)

    # ---- two-pass path ----------------------------------------------------
    if hw_tile is None:
        tile_budget = min(8 << 20, vmem_limit // 8)          # ~6-8 MiB per x tile
        hw_tile = _pick_hw_tile(HW, C, itemsize, tile_budget)
    assert hw_tile == HW or hw_tile % 128 == 0
    n_tiles = pl.cdiv(HW, hw_tile)
    needs_mask = (HW % hw_tile) != 0

    # Pass 1: per-(N, C) sums; HW is the reduction ("arbitrary") axis.
    sums = pl.pallas_call(
        functools.partial(_pool_sum_kernel, hw=HW, hw_tile=hw_tile,
                          needs_mask=needs_mask),
        out_shape=jax.ShapeDtypeStruct((N, C, 1), jnp.float32),
        grid_spec=pltpu.PrefetchScalarGridSpec(
            num_scalar_prefetch=0,
            grid=(N, n_tiles),
            in_specs=[pl.BlockSpec((1, C, hw_tile), lambda n, t: (n, 0, t))],
            out_specs=pl.BlockSpec((1, C, 1), lambda n, t: (n, 0, 0)),
        ),
        compiler_params=pltpu.CompilerParams(
            dimension_semantics=("parallel", "arbitrary"),
            vmem_limit_bytes=vmem_limit),
        cost_estimate=pl.CostEstimate(
            flops=int(N * C * HW), transcendentals=0,
            bytes_accessed=int(N * C * HW * itemsize + N * C * 4)),
    )(x)

    # cSE gate math hoisted out of the kernel: tiny FC->ReLU->FC->sigmoid on (N,C).
    mean = sums[:, :, 0] * (1.0 / HW)                                        # (N, C)
    h = jnp.maximum(mean @ w1t.T.astype(jnp.float32)
                    + b1[:, 0].astype(jnp.float32)[None, :], 0.0)            # (N, Cr)
    cse = jax.nn.sigmoid(h @ w2t.T.astype(jnp.float32)
                         + b2[:, 0].astype(jnp.float32)[None, :])            # (N, C)
    gate = cse[:, :, None]                                                   # (N, C, 1)

    # Pass 2: sSE + combine, fully parallel over (N, HW tiles).
    out = pl.pallas_call(
        _scse_apply_kernel,
        out_shape=jax.ShapeDtypeStruct((N, C, HW), dt),
        grid_spec=pltpu.PrefetchScalarGridSpec(
            num_scalar_prefetch=0,
            grid=(N, n_tiles),
            in_specs=[
                pl.BlockSpec((1, C, hw_tile), lambda n, t: (n, 0, t)),   # x
                pl.BlockSpec((1, C, 1), lambda n, t: (n, 0, 0)),          # cSE gate
                pl.BlockSpec((1, C), lambda n, t: (0, 0)),                # ws (row)
                pl.BlockSpec(memory_space=pltpu.MemorySpace.SMEM),        # bs scalar
            ],
            out_specs=pl.BlockSpec((1, C, hw_tile), lambda n, t: (n, 0, t)),
        ),
        compiler_params=pltpu.CompilerParams(
            dimension_semantics=("parallel", "parallel"),
            vmem_limit_bytes=vmem_limit),
        cost_estimate=pl.CostEstimate(
            flops=int(3 * N * C * HW), transcendentals=int(N * HW),
            bytes_accessed=int(2 * N * C * HW * itemsize)),
    )(x, gate, ws_row, bs2)

    return out.reshape(N, C, H, W)


# ---------------------------------------------------------------------------
# Pure-JAX reference reproducing the PyTorch forward
# ---------------------------------------------------------------------------
def scse_reference(x, w1t, b1, w2t, b2, ws, bs):
    mean = jnp.mean(x, axis=(2, 3))                                  # (N, C)
    h = jnp.maximum(mean @ w1t.T + b1[:, 0], 0.0)                    # (N, Cr)
    cse = jax.nn.sigmoid(h @ w2t.T + b2[:, 0])                       # (N, C)
    sse = jax.nn.sigmoid(jnp.einsum("nchw,c->nhw", x, ws[:, 0]) + bs[0, 0])
    return x * (cse[:, :, None, None] + sse[:, None, :, :])


if __name__ == "__main__":
    N, C, reduction = 2, 32, 16          # Cr = 2

    def make_inputs(H, W, dtype):
        Cr = C // reduction
        key = jax.random.PRNGKey(0)
        kx, k1, k2, k3, k4, k5, k6 = jax.random.split(key, 7)
        x = jax.random.normal(kx, (N, C, H, W), jnp.float32).astype(dtype)
        w1t = jax.random.normal(k1, (Cr, C), jnp.float32) * 0.1   # cSE conv1
        b1 = jax.random.normal(k2, (Cr, 1), jnp.float32) * 0.1
        w2t = jax.random.normal(k3, (C, Cr), jnp.float32) * 0.1   # cSE conv2
        b2 = jax.random.normal(k4, (C, 1), jnp.float32) * 0.1
        ws = jax.random.normal(k5, (C, 1), jnp.float32) * 0.1     # sSE conv
        bs = jax.random.normal(k6, (1, 1), jnp.float32) * 0.1
        return x, w1t, b1, w2t, b2, ws, bs

    def check(name, dtype, H, W, atol, rtol, **kw):
        x, *weights = make_inputs(H, W, dtype)
        out = jax.block_until_ready(scse_pallas(x, *weights, **kw))
        ref = scse_reference(x.astype(jnp.float32), *weights)
        assert out.shape == (N, C, H, W), f"{name}: bad shape {out.shape}"
        ok = jnp.allclose(out.astype(jnp.float32), ref, atol=atol, rtol=rtol)
        assert bool(ok), f"{name}: mismatch vs reference"

    # 1) Fused single-pass path (per-batch slab fits VMEM), f32 I/O.
    check("fused_f32", jnp.float32, 16, 16, atol=2e-3, rtol=2e-3)
    # 2) Two-pass path exercising multi-tile HW accumulation (2 tiles of 128).
    check("two_pass_f32", jnp.float32, 16, 16, atol=2e-3, rtol=2e-3,
          force_two_pass=True, hw_tile=128)
    # 3) Two-pass path with non-128-aligned HW (192 -> remainder lane masking).
    check("masked_f32", jnp.float32, 16, 12, atol=2e-3, rtol=2e-3,
          force_two_pass=True, hw_tile=128)
    # 4) bf16 I/O through the fused path (gate math stays f32).
    check("fused_bf16", jnp.bfloat16, 16, 16, atol=3e-2, rtol=3e-2)

    print("KERNEL_OK")
</pallas_src>

<mosaic_0001>
module attributes {stable_mosaic.version = 11 : i64} {
  func.func @_scse_fused_kernel(%arg0: i32, %arg1: memref<1x32x256xf32, #tpu.memory_space<vmem>>, %arg2: memref<2x32xf32, #tpu.memory_space<vmem>>, %arg3: memref<2x1xf32, #tpu.memory_space<vmem>>, %arg4: memref<32x2xf32, #tpu.memory_space<vmem>>, %arg5: memref<32x1xf32, #tpu.memory_space<vmem>>, %arg6: memref<1x32xf32, #tpu.memory_space<vmem>>, %arg7: memref<1x1xf32, #tpu.memory_space<smem>>, %arg8: memref<1x32x256xf32, #tpu.memory_space<vmem>>) attributes {dimension_semantics = [#tpu.dimension_semantics<parallel>], iteration_bounds = array<i64: 2>, scalar_prefetch = 0 : i64, scratch_operands = 0 : i64, tpu.core_type = #tpu.core_type<tc>, window_params = [{transform_indices = @transform_0, window_bounds = array<i64: 1, 32, 256>}, {pipeline_mode = #tpu.pipeline_mode<synchronous>, transform_indices = @transform_1, window_bounds = array<i64: 2, 32>}, {pipeline_mode = #tpu.pipeline_mode<synchronous>, transform_indices = @transform_2, window_bounds = array<i64: 2, 1>}, {pipeline_mode = #tpu.pipeline_mode<synchronous>, transform_indices = @transform_3, window_bounds = array<i64: 32, 2>}, {pipeline_mode = #tpu.pipeline_mode<synchronous>, transform_indices = @transform_4, window_bounds = array<i64: 32, 1>}, {pipeline_mode = #tpu.pipeline_mode<synchronous>, transform_indices = @transform_5, window_bounds = array<i64: 1, 32>}, {transform_indices = @transform_6, window_bounds = array<i64: 1, 1>}, {transform_indices = @transform_7, window_bounds = array<i64: 1, 32, 256>}]} {
    %c0 = arith.constant 0 : index
    %c0_0 = arith.constant 0 : index
    %c0_1 = arith.constant 0 : index
    %0 = vector.load %arg1[%c0, %c0_0, %c0_1] : memref<1x32x256xf32, #tpu.memory_space<vmem>>, vector<1x32x256xf32>
    %1 = vector.shape_cast %0 : vector<1x32x256xf32> to vector<32x256xf32>
    %cst = arith.constant dense<0.000000e+00> : vector<32xf32>
    %2 = vector.multi_reduction <add>, %1, %cst [1] : vector<32x256xf32> to vector<32xf32>
    %3 = vector.shape_cast %2 : vector<32xf32> to vector<32x1xf32>
    %cst_2 = arith.constant 3.906250e-03 : f32
    %4 = vector.broadcast %cst_2 : f32 to vector<32x1xf32>
    %5 = arith.mulf %3, %4 : vector<32x1xf32>
    %c0_3 = arith.constant 0 : index
    %c0_4 = arith.constant 0 : index
    %6 = vector.load %arg2[%c0_3, %c0_4] : memref<2x32xf32, #tpu.memory_space<vmem>>, vector<2x32xf32>
    %cst_5 = arith.constant dense<0.000000e+00> : vector<2x1xf32>
    %7 = tpu.matmul %6, %5, %cst_5 {dimension_numbers = #tpu.dot_dimension_numbers<[1], [0], [0], [1], [0, 0, 1, 1], [], []>} : vector<2x32xf32>, vector<32x1xf32>, vector<2x1xf32> -> vector<2x1xf32>
    %c0_6 = arith.constant 0 : index
    %c0_7 = arith.constant 0 : index
    %8 = vector.load %arg3[%c0_6, %c0_7] : memref<2x1xf32, #tpu.memory_space<vmem>>, vector<2x1xf32>
    %9 = arith.addf %7, %8 : vector<2x1xf32>
    %cst_8 = arith.constant 0.000000e+00 : f32
    %10 = vector.broadcast %cst_8 : f32 to vector<2x1xf32>
    %11 = arith.maximumf %9, %10 : vector<2x1xf32>
    %c0_9 = arith.constant 0 : index
    %c0_10 = arith.constant 0 : index
    %12 = vector.load %arg4[%c0_9, %c0_10] : memref<32x2xf32, #tpu.memory_space<vmem>>, vector<32x2xf32>
    %cst_11 = arith.constant dense<0.000000e+00> : vector<32x1xf32>
    %13 = tpu.matmul %12, %11, %cst_11 {dimension_numbers = #tpu.dot_dimension_numbers<[1], [0], [0], [1], [0, 0, 1, 1], [], []>} : vector<32x2xf32>, vector<2x1xf32>, vector<32x1xf32> -> vector<32x1xf32>
    %c0_12 = arith.constant 0 : index
    %c0_13 = arith.constant 0 : index
    %14 = vector.load %arg5[%c0_12, %c0_13] : memref<32x1xf32, #tpu.memory_space<vmem>>, vector<32x1xf32>
    %15 = arith.addf %13, %14 : vector<32x1xf32>
    %16 = arith.negf %15 : vector<32x1xf32>
    %17 = math.exp %16 : vector<32x1xf32>
    %cst_14 = arith.constant 1.000000e+00 : f32
    %18 = vector.broadcast %cst_14 : f32 to vector<32x1xf32>
    %19 = arith.addf %18, %17 : vector<32x1xf32>
    %20 = arith.divf %18, %19 : vector<32x1xf32>
    %c0_15 = arith.constant 0 : index
    %c0_16 = arith.constant 0 : index
    %21 = vector.load %arg6[%c0_15, %c0_16] : memref<1x32xf32, #tpu.memory_space<vmem>>, vector<1x32xf32>
    %cst_17 = arith.constant dense<0.000000e+00> : vector<1x256xf32>
    %22 = tpu.matmul %21, %1, %cst_17 {dimension_numbers = #tpu.dot_dimension_numbers<[1], [0], [0], [1], [0, 0, 1, 1], [], []>} : vector<1x32xf32>, vector<32x256xf32>, vector<1x256xf32> -> vector<1x256xf32>
    %c0_18 = arith.constant 0 : index
    %c0_19 = arith.constant 0 : index
    %23 = memref.load %arg7[%c0_18, %c0_19] : memref<1x1xf32, #tpu.memory_space<smem>>
    %24 = vector.broadcast %23 : f32 to vector<1x256xf32>
    %25 = arith.addf %22, %24 : vector<1x256xf32>
    %26 = arith.negf %25 : vector<1x256xf32>
    %27 = math.exp %26 : vector<1x256xf32>
    %cst_20 = arith.constant 1.000000e+00 : f32
    %28 = vector.broadcast %cst_20 : f32 to vector<1x256xf32>
    %29 = arith.addf %28, %27 : vector<1x256xf32>
    %30 = arith.divf %28, %29 : vector<1x256xf32>
    %31 = vector.broadcast %20 : vector<32x1xf32> to vector<32x256xf32>
    %32 = vector.broadcast %30 : vector<1x256xf32> to vector<32x256xf32>
    %33 = arith.addf %31, %32 : vector<32x256xf32>
    %34 = arith.mulf %1, %33 : vector<32x256xf32>
    %c0_21 = arith.constant 0 : index
    %c0_22 = arith.constant 0 : index
    %c0_23 = arith.constant 0 : index
    %35 = vector.load %arg8[%c0_21, %c0_22, %c0_23] : memref<1x32x256xf32, #tpu.memory_space<vmem>>, vector<1x32x256xf32>
    %36 = vector.shape_cast %35 : vector<1x32x256xf32> to vector<32x256xf32>
    %37 = vector.shape_cast %34 : vector<32x256xf32> to vector<1x32x256xf32>
    tpu.vector_store %arg8[%c0_21, %c0_22, %c0_23], %37 {strides = array<i32>} : memref<1x32x256xf32, #tpu.memory_space<vmem>>, vector<1x32x256xf32>,
    return
  }
  func.func @transform_0(%arg0: i32) -> (i32, i32, i32) {
    %c0_i32 = arith.constant 0 : i32
    %c0_i32_0 = arith.constant 0 : i32
    %c0_i32_1 = arith.constant 0 : i32
    return %arg0, %c0_i32, %c0_i32_0 : i32, i32, i32
  }
  func.func @transform_1(%arg0: i32) -> (i32, i32) {
    %c0_i32 = arith.constant 0 : i32
    %c0_i32_0 = arith.constant 0 : i32
    %c0_i32_1 = arith.constant 0 : i32
    return %c0_i32, %c0_i32_0 : i32, i32
  }
  func.func @transform_2(%arg0: i32) -> (i32, i32) {
    %c0_i32 = arith.constant 0 : i32
    %c0_i32_0 = arith.constant 0 : i32
    %c0_i32_1 = arith.constant 0 : i32
    return %c0_i32, %c0_i32_0 : i32, i32
  }
  func.func @transform_3(%arg0: i32) -> (i32, i32) {
    %c0_i32 = arith.constant 0 : i32
    %c0_i32_0 = arith.constant 0 : i32
    %c0_i32_1 = arith.constant 0 : i32
    return %c0_i32, %c0_i32_0 : i32, i32
  }
  func.func @transform_4(%arg0: i32) -> (i32, i32) {
    %c0_i32 = arith.constant 0 : i32
    %c0_i32_0 = arith.constant 0 : i32
    %c0_i32_1 = arith.constant 0 : i32
    return %c0_i32, %c0_i32_0 : i32, i32
  }
  func.func @transform_5(%arg0: i32) -> (i32, i32) {
    %c0_i32 = arith.constant 0 : i32
    %c0_i32_0 = arith.constant 0 : i32
    %c0_i32_1 = arith.constant 0 : i32
    return %c0_i32, %c0_i32_0 : i32, i32
  }
  func.func @transform_6(%arg0: i32) -> (i32, i32) {
    %c0_i32 = arith.constant 0 : i32
    %c0_i32_0 = arith.constant 0 : i32
    %c0_i32_1 = arith.constant 0 : i32
    return %c0_i32, %c0_i32_0 : i32, i32
  }
  func.func @transform_7(%arg0: i32) -> (i32, i32, i32) {
    %c0_i32 = arith.constant 0 : i32
    %c0_i32_0 = arith.constant 0 : i32
    %c0_i32_1 = arith.constant 0 : i32
    return %arg0, %c0_i32, %c0_i32_0 : i32, i32, i32
  }
}

</mosaic_0001>

<bundles_post_ra>
// kernel: tpu_custom_call.1
= control target key start
LH: loop header
LB: loop body
LE: loop exit
PB: predicated region body
PF: predicated region fallthrough
CT: control target
= control target key end

     0   :  { %s1159_s0 = inlined_call_operand.hbm [shape: f32[2,32,256], index: 0, kind: input, shape index: {}]   ;;  %s1160_s1 = inlined_call_operand.vmem [shape: f32[2,32], index: 1, kind: input, shape index: {}]   ;;  %s1161_s2 = inlined_call_operand.vmem [shape: f32[2,1], index: 2, kind: input, shape index: {}]   ;;  %s1162_s3 = inlined_call_operand.vmem [shape: f32[32,2], index: 3, kind: input, shape index: {}]   ;;  %s1163_s4 = inlined_call_operand.vmem [shape: f32[32,1], index: 4, kind: input, shape index: {}]   ;;  %s1164_s5 = inlined_call_operand.vmem [shape: f32[1,32], index: 5, kind: input, shape index: {}]   ;;  %s1165_s6 = inlined_call_operand.<no memory space> [shape: f32[1,1], index: 6, kind: input, shape index: {}]   ;;  %s1166_s7 = inlined_call_operand.hbm [shape: f32[2,32,256], index: 7, kind: output, shape index: {}]  }
   0x1   :  { %12 = sst [smem:[#allocation2]] %s1165_s6 }
   0x2   :  { %13 = vsyncpa [#allocation4], 0 }
   0x3   :  { %15 = vsyncpa [#allocation4 + $0x1], 0 }
   0x4   :  { %16 = vsyncpa [#allocation5], 0 }
   0x5   :  { %18 = vsyncpa [#allocation5 + $0x1], 0  ;;  %s955_s26 = smov 0   ;;  %s957_s27 = smov 0  }
   0x6   :  { %s959_s28 = smov 0   ;;  %s961_s29 = smov 0  }
   0x7 LB: > { %s976_s6 = sadd.s32 4294967295, %s905_s29   ;;  %s700_s30 = sadd.s32 4294967294, %s905_s29   ;;  %s905_s29 = sphi %s961_s29, %s1176_s29   ;;  %s901_s28 = sphi %s959_s28, %s1175_s28   ;;  %s897_s27 = sphi %s957_s27, %s1174_s27   ;;  %s893_s26 = sphi %s955_s26, %s1173_s26  }
   0x8   : > { %s980_s8 = sadd.s32 1, %s905_s29   ;;  %s31_s9 = sadd.s32 1, %s901_s28 }
   0x9   : > { %s28_s10 = ssub.s32 %s905_s29, %s980_s8  ;;  %p38_p0 = scmp.ne.s32.totalorder %s901_s28, %s897_s27 }
   0xa   : > { %p29_p1 = scmp.eq.s32.totalorder %s28_s10, 0  ;;  %p39_p2 = scmp.eq.s32.totalorder %s905_s29, 0 }
   0xb   : > { %p44_p3 = scmp.ne.s32.totalorder %s897_s27, %s893_s26  ;;  %p45_p4 = scmp.eq.s32.totalorder %s976_s6, 0 }
   0xc   : > { %s992_s11 = scalar_select %p29_p1, %s901_s28, %s31_s9  }
   0xd   : > { %p994_p5 = por %p39_p2, %p38_p0  ;;  %p998_p6 = por %p45_p4, %p44_p3 }
   0xe   : > { %p194_p7 = scmp.eq.s32.totalorder %s976_s6, 1  ;;  %p200_p8 = scmp.eq.s32.totalorder %s700_s30, 1 }
   0xf   : > { %p743_p10 = scmp.lt.s32.totalorder %s905_s29, 2  ;;  %s238_s16 = sand.u32 1, %s901_s28  }
  0x10   : > { %p1005_p11 = por %p194_p7, %p38_p0  ;;  %p1009_p12 = por %p200_p8, %p44_p3 }
  0x11   : > { %s728_s17 = sshll.u32 %s905_s29, 6  ;;  %s703_s18 = sshll.u32 %s238_s16, 6 }
  0x12   : > { %s247_s21 = scalar_lea.hbm %s1159_s0, %s728_s17  ;;  %s242_s23 = scalar_lea.vmem [#allocation3], %s703_s18 }
  0x13   : > { %s248_s22 = sshll.u32 %s247_s21, 4  ;;  %s250_s24 = sshll.u32 %s242_s23, 4  ;;  %s249_s22 = int_to_ptr.hbm [resolvable:$true] %s248_s22  ;;  %s251_s24 = int_to_ptr.vmem [resolvable:$true] %s250_s24 }
  0x14   : > { %p1020_p13 = pnand %p743_p10, %p994_p5  ;;  %p706_p0 = scmp.ge.s32.totalorder %s905_s29, 1 }
  0x15   : > { %p258_p1 = scmp.lt.s32.totalorder %s905_s29, 3  ;;  %s239_s30 = scalar_lea.sflag [#allocation4], %s238_s16 }
  0x16   : > { %s809_s9 = sshra.s32 %s249_s22, 4  ;;  %p813_p3 = pneg %p1020_p13  ;;  %s810_s9 = int_to_ptr.hbm [resolvable:$true] %s809_s9 }
  0x17   : > { %s811_s10 = scalar_lea.hbm %s810_s9, 64  ;;  %s816_s12 = scalar_lea.hbm %s1159_s0, 128 }
  0x18   : > { %p812_p2 = scmp.ne.s32.totalorder %s810_s9, %s811_s10  ;;  %p817_p5 = scmp.lt.s32.totalorder %s810_s9, %s1159_s0 }
  0x19   : > { %p818_p8 = scmp.lt.s32.totalorder %s816_s12, %s811_s10 }
  0x1a   : > { %p814_p4 = pnand %p813_p3, %p812_p2 }
  0x1b   : > { %p819_p10 = por %p818_p8, %p817_p5 }
  0x1c   : > { %p815_p7 = pneg %p814_p4 }
  0x1e   : > { %p820_p9 = pnand %p819_p10, %p815_p7 }
  0x20   : > { %823 = shalt.err (!%p820_p9)
}
  0x21   : > { %s907_s16 = smov 256   ;;  %s908_s21 = smov 16  }
  0x22   : > { %738 = dma.hbm_to_vmem [thread:$0]  (!%p1020_p13), %s249_s22, 1024, %s251_s24, %s239_s30, %s907_s16, %s907_s16, %s908_s21  }
  0x23   : > { %p259_p2 = pnand %p706_p0, %p258_p1 }
  0x24   : > { %s1041_s23 = sand.u32 (!%p259_p2), 1, %s897_s27  }
  0x25   : > { %262 = sbr.rel (%p259_p2) target bundleno = 604 (0x25c), region = 48  ;;  %s707_s9 = sshll.u32 (!%p259_p2), %s1041_s23, 6 }
  0x26   : > { %s265_s10 = scalar_lea.sflag (!%p259_p2), [#allocation4], %s1041_s23  ;;  %s268_s17 = scalar_lea.vmem (!%p259_p2), [#allocation3], %s707_s9 }
  0x2a   : > { %884 = dma.done.wait (%p998_p6), %s265_s10, 1024  }
  0x2b   : > { %886 = vsyncadd (%p998_p6), %s265_s10, 4294966272  ;;  %v1051_v0 = vld [vmem:[%s268_s17 + $0x30] sm:$0xff]  ;;  %v1053_v1 = vld [vmem:[%s268_s17 + $0x38] sm:$0xff]  ;;  %vm326_vm0 = vcmask 261120   ;;  %vm372_vm1 = vcmask 1041408   ;;  %vm359_vm2 = vcmask 15360  }
  0x2c   : > { %v1055_v2 = vld [vmem:[%s268_s17 + $0x10] sm:$0xff]  ;;  %v317_v3 = vadd.f32 %v1053_v1, %v1051_v0  ;;  %v1059_v4 = vld [vmem:[%s268_s17 + $0x18] sm:$0xff]  ;;  %499 = vmatpush.msra.mxu2 %v1051_v0  ;;  %519 = vmatpush.msra.mxu3 %v1053_v1  ;;  %v1065_v6 = vld [vmem:[%s268_s17 + $0x20] sm:$0xff]  ;;  %v909_v32 = vmov 0   ;;  %s482_s16 = sld [smem:[#allocation2]]  ;;  %s299_s21 = scalar_lea.vmem [#allocation6], %s707_s9 }
  0x2d   : > { %v311_v5 = vadd.f32 %v1059_v4, %v1055_v2  ;;  %v1067_v7 = vld [vmem:[%s268_s17 + $0x28] sm:$0xff]  ;;  %v1071_v8 = vld [vmem:[%s268_s17] sm:$0xff]  ;;  %v353_v28 = vld [vmem:[%s1162_s3 + $0x10] sm:$0xff]  ;;  %782 = vset.pattern.permute.xlu2 %v909_v32  ;;  %783 = vset.pattern.permute.xlu0 %v909_v32  ;;  %s729_s10 = sshll.u32 %s976_s6, 6  ;;  %s624_s22 = sshll.u32 %s299_s21, 4  ;;  %s625_s22 = int_to_ptr.vmem [resolvable:$true] %s624_s22 }
  0x2e   : > { %318 = vadd.xlane.f32.xlu0 %v317_v3  ;;  %500 = vmatpush.msra.mxu2 %v1065_v6  ;;  %v1073_v9 = vld [vmem:[%s268_s17 + $0x8] sm:$0xff]  ;;  %v314_v10 = vadd.f32 %v1067_v7, %v1065_v6  ;;  %v324_v20 = vld [vmem:[%s1160_s1] sm:$0x3]  ;;  %v354_v29 = vld [vmem:[%s1162_s3 + $0x18] sm:$0xff]  ;;  %s623_s13 = scalar_lea.hbm %s1166_s7, %s729_s10  ;;  %s612_s6 = scalar_lea.sflag [#allocation5], %s1041_s23 }
  0x2f   : > { %312 = vadd.xlane.f32.xlu1 %v311_v5  ;;  %520 = vmatpush.msra.mxu3 %v1067_v7  ;;  %v308_v11 = vadd.f32 %v1073_v9, %v1071_v8  ;;  %v481_v21 = vld [vmem:[%s1164_s5] sm:$0x1]  ;;  %v352_v27 = vld [vmem:[%s1162_s3 + $0x8] sm:$0xff]  ;;  %v357_v39 = vld [vmem:[%s1163_s4 + $0x10] sm:$0xff]  ;;  %s626_s24 = sshll.u32 %s623_s13, 4  ;;  %s859_s19 = scalar_lea.hbm %s1166_s7, 128  ;;  %s627_s24 = int_to_ptr.hbm [resolvable:$true] %s626_s24 }
  0x30   : > { %501 = vmatpush.msra.mxu2 %v1055_v2  ;;  %v325_v22 = vld [vmem:[%s1161_s2] sm:$0x3]  ;;  %v356_v31 = vld [vmem:[%s1163_s4 + $0x8] sm:$0xff]  ;;  %784 = vset.pattern.permute.xlu1 %v909_v32  ;;  %v358_v47 = vld [vmem:[%s1163_s4 + $0x18] sm:$0xff]  ;;  %s853_s25 = sshra.s32 %s627_s24, 4  ;;  %s854_s25 = int_to_ptr.hbm [resolvable:$true] %s853_s25 }
  0x31   : > { %521 = vmatpush.msra.mxu3 %v1059_v4  ;;  %v351_v26 = vld [vmem:[%s1162_s3] sm:$0xff]  ;;  %s855_s30 = scalar_lea.hbm %s854_s25, 64  ;;  %p860_p0 = scmp.lt.s32.totalorder %s854_s25, %s1166_s7 }
  0x32   : > { %502 = vmatpush.msra.mxu2 %v1071_v8  ;;  %v355_v30 = vld [vmem:[%s1163_s4] sm:$0xff]  ;;  %p856_p6 = scmp.ne.s32.totalorder %s854_s25, %s855_s30  ;;  %p861_p1 = scmp.lt.s32.totalorder %s859_s19, %s855_s30 }
  0x33   : > { %522 = vmatpush.msra.mxu3 %v1073_v9  ;;  %719 = vmatmul.msk.f32.vlgmr.msra.gmra.mxu2 %vm326_vm0, %v481_v21 }
  0x34   : > { %720 = vmatmul.msk.f32.vlgmr.msra.gmra.mxu3 %vm326_vm0, %v481_v21  ;;  %p857_p9 = pnand %p856_p6, %p1005_p11  ;;  %p862_p3 = por %p861_p1, %p860_p0 }
  0x36   : > { %315 = vadd.xlane.f32.xlu0 %v314_v10  ;;  %p858_p13 = pneg %p857_p9 }
  0x37   : > { %309 = vadd.xlane.f32.xlu1 %v308_v11 }
  0x38   : > { %p863_p4 = pnand %p862_p3, %p858_p13 }
  0xa1   : > { %v319_v12 = vpop.xlane.xlu0 %318 }
  0xa2   : > { %v323_v13 = vmul.f32 0.00390625, %v319_v12  ;;  %v313_v14 = vpop.xlane.xlu1 %312 }
  0xa3   : > { %v321_v18 = vmul.f32 0.00390625, %v313_v14 }
  0xa4   : > { %342 = vmatpush.msra.mxu0 %v323_v13 }
  0xa9   : > { %v316_v15 = vpop.xlane.xlu0 %315 }
  0xaa   : > { %v322_v16 = vmul.f32 0.00390625, %v316_v15  ;;  %v310_v17 = vpop.xlane.xlu1 %309 }
  0xab   : > { %v320_v19 = vmul.f32 0.00390625, %v310_v17 }
  0xac   : > { %343 = vmatpush.msra.mxu0 %v322_v16 }
  0xae   : > { %344 = vmatpush.msra.mxu0 %v321_v18 }
  0xb0   : > { %345 = vmatpush.msra.mxu0 %v320_v19 }
  0xb1   : > { %709 = vmatmul.msk.f32.vlgmr.msra.gmra.mxu0 %vm326_vm0, %v324_v20 }
 0x12e   : > { %v347_v23 = vpop.f32.mrf.mxu0 }
 0x12f   : > { %v348_v24 = vadd.f32 %v347_v23, %v325_v22 }
 0x131   : > { %v350_v25 = vmax.f32 %v348_v24, 0.0 }
 0x133   : > { %710 = vmatpush.msk.msrb.mxu0 %vm372_vm1, %v350_v25  ;;  %730 = vmatpush.msk.msra.mxu1 %vm372_vm1, %v350_v25 }
 0x134   : > { %711 = vmatmul.msk.f32.vlgmr.msrb.gmra.mxu0 %vm359_vm2, %v351_v26  ;;  %712 = vmatmul.msk.f32.vlgmr.msra.gmra.mxu1 %vm359_vm2, %v352_v27 }
 0x13c   : > { %713 = vmatmul.msk.f32.gmra.mxu1 %vm359_vm2, %v353_v28 }
 0x144   : > { %714 = vmatmul.msk.f32.gmra.mxu1 %vm359_vm2, %v354_v29 }
 0x1b1   : > { %v393_v33 = vpop.f32.mrf.mxu0  ;;  %v396_v34 = vpop.f32.mrf.mxu1 }
 0x1b2   : > { %v394_v35 = vadd.f32 %v393_v33, %v355_v30  ;;  %v397_v36 = vadd.f32 %v396_v34, %v356_v31 }
 0x1b4   : > { %v715_v37 = vmul.f32 -1.442695, %v394_v35  ;;  %v716_v38 = vmul.f32 -1.442695, %v397_v36 }
 0x1b6   : > { %785 = vpow2.f32 %v715_v37 }
 0x1b7   : > { %787 = vpow2.f32 %v716_v38 }
 0x1b9   : > { %v399_v40 = vpop.f32.mrf.mxu1 }
 0x1ba   : > { %v400_v41 = vadd.f32 %v399_v40, %v357_v39  ;;  %v483_v39 = vstv %s482_s16  ;;  %v504_v40 = vpop.f32.mrf.mxu2 }
 0x1bc   : > { %v786_v42 = vpop.eup %785  ;;  %v717_v43 = vmul.f32 -1.442695, %v400_v41  ;;  %v524_v41 = vpop.f32.mrf.mxu3 }
 0x1bd   : > { %v788_v44 = vpop.eup %787  ;;  %v417_v45 = vadd.f32 1.0, %v786_v42  ;;  %v505_v42 = vadd.f32 %v504_v40, %v483_v39 }
 0x1be   : > { %v418_v46 = vadd.f32 1.0, %v788_v44  ;;  %789 = vpow2.f32 %v717_v43  ;;  %v525_v43 = vadd.f32 %v524_v41, %v483_v39 }
 0x1bf   : > { %791 = vrcp.f32 %v417_v45  ;;  %vm426_vm3 = vweird.f32 %v417_v45  ;;  %v432_v56 = vand.u32 2147483648, %v417_v45  ;;  %v430_v58 = vand.u32 2147483647, %v417_v45 }
 0x1c0   : > { %793 = vrcp.f32 %v418_v46  ;;  %vm441_vm8 = vweird.f32 %v418_v46  ;;  %v447_v18 = vand.u32 2147483648, %v418_v46  ;;  %v445_v21 = vand.u32 2147483647, %v418_v46 }
 0x1c1   : > { %v402_v48 = vpop.f32.mrf.mxu1  ;;  %v433_v62 = vor.u32 1.1754944e-38, %v432_v56  ;;  %vm431_vm6 = vcmp.eq.f32.partialorder %v430_v58, 8.507059e+37  ;;  %v721_v44 = vmul.f32 -1.442695, %v505_v42 }
 0x1c2   : > { %v403_v49 = vadd.f32 %v402_v48, %v358_v47  ;;  %v448_v26 = vor.u32 1.1754944e-38, %v447_v18  ;;  %vm446_vm14 = vcmp.eq.f32.partialorder %v445_v21, 8.507059e+37 }
 0x1c4   : > { %v790_v50 = vpop.eup %789  ;;  %v718_v51 = vmul.f32 -1.442695, %v403_v49 }
 0x1c5   : > { %v792_v52 = vpop.eup %791  ;;  %v419_v53 = vadd.f32 1.0, %v790_v50 }
 0x1c6   : > { %v794_v54 = vpop.eup %793  ;;  %795 = vpow2.f32 %v718_v51  ;;  %v422_v55 = vmul.f32 %v792_v52, %v417_v45  ;;  %vm427_vm4 = vweird.f32 %v792_v52  ;;  %v722_v45 = vmul.f32 -1.442695, %v525_v43 }
 0x1c7   : > { %797 = vrcp.f32 %v419_v53  ;;  %v437_v59 = vmul.f32 %v794_v54, %v418_v46  ;;  %vm428_vm5 = vmor %vm426_vm3, %vm427_vm4  ;;  %vm442_vm7 = vweird.f32 %v794_v54  ;;  %v462_v17 = vand.u32 2147483648, %v419_v53 }
 0x1c8   : > { %v423_v57 = vsub.f32 1.0, %v422_v55  ;;  %v460_v20 = vand.u32 2147483647, %v419_v53  ;;  %vm443_vm10 = vmor %vm441_vm8, %vm442_vm7  ;;  %vm456_vm11 = vweird.f32 %v419_v53 }
 0x1c9   : > { %v438_v61 = vsub.f32 1.0, %v437_v59  ;;  %v463_v25 = vor.u32 1.1754944e-38, %v462_v17 }
 0x1ca   : > { %v424_v60 = vmul.f32 %v792_v52, %v423_v57  ;;  %vm461_vm13 = vcmp.eq.f32.partialorder %v460_v20, 8.507059e+37 }
 0x1cb   : > { %v439_v5 = vmul.f32 %v794_v54, %v438_v61 }
 0x1cc   : > { %v796_v63 = vpop.eup %795  ;;  %v425_v3 = vadd.f32 %v792_v52, %v424_v60 }
 0x1cd   : > { %v798_v10 = vpop.eup %797  ;;  %v420_v11 = vadd.f32 1.0, %v796_v63  ;;  %v440_v16 = vadd.f32 %v794_v54, %v439_v5 }
 0x1ce   : > { %v429_v12 = vsel %vm428_vm5, %v792_v52, %v425_v3  ;;  %v452_v13 = vmul.f32 %v798_v10, %v419_v53  ;;  %vm457_vm9 = vweird.f32 %v798_v10 }
 0x1cf   : > { %799 = vrcp.f32 %v420_v11  ;;  %v434_v14 = vsel %vm431_vm6, %v433_v62, %v429_v12  ;;  %v444_v23 = vsel %vm443_vm10, %v794_v54, %v440_v16  ;;  %vm458_vm12 = vmor %vm456_vm11, %vm457_vm9  ;;  %v477_v32 = vand.u32 2147483648, %v420_v11 }
 0x1d0   : > { %567 = vperm.xlu2 %782, %v434_v14   ;;  %v453_v15 = vsub.f32 1.0, %v452_v13  ;;  %v449_v30 = vsel %vm446_vm14, %v448_v26, %v444_v23  ;;  %v475_v34 = vand.u32 2147483647, %v420_v11  ;;  %vm471_vm0 = vweird.f32 %v420_v11 }
 0x1d1   : > { %v478_v36 = vor.u32 1.1754944e-38, %v477_v32  ;;  %801 = vpow2.f32 %v721_v44 }
 0x1d2   : > { %v454_v19 = vmul.f32 %v798_v10, %v453_v15  ;;  %vm476_vm2 = vcmp.eq.f32.partialorder %v475_v34, 8.507059e+37  ;;  %803 = vpow2.f32 %v722_v45 }
 0x1d4   : > { %v455_v22 = vadd.f32 %v798_v10, %v454_v19 }
 0x1d5   : > { %v800_v24 = vpop.eup %799 }
 0x1d6   : > { %v459_v27 = vsel %vm458_vm12, %v798_v10, %v455_v22  ;;  %v467_v28 = vmul.f32 %v800_v24, %v420_v11  ;;  %vm472_vm15 = vweird.f32 %v800_v24 }
 0x1d7   : > { %v464_v29 = vsel %vm461_vm13, %v463_v25, %v459_v27  ;;  %vm473_vm1 = vmor %vm471_vm0, %vm472_vm15  ;;  %v802_v46 = vpop.eup %801 }
 0x1d8   : > { %577 = vperm.xlu0 %783, %v464_v29   ;;  %572 = vperm.xlu2 %782, %v449_v30   ;;  %v468_v31 = vsub.f32 1.0, %v467_v28  ;;  %v804_v47 = vpop.eup %803  ;;  %v533_v48 = vadd.f32 1.0, %v802_v46 }
 0x1d9   : > { %v534_v49 = vadd.f32 1.0, %v804_v47 }
 0x1da   : > { %v469_v33 = vmul.f32 %v800_v24, %v468_v31  ;;  %805 = vrcp.f32 %v533_v48  ;;  %vm540_vm3 = vweird.f32 %v533_v48  ;;  %v546_v58 = vand.u32 2147483648, %v533_v48 }
 0x1db   : > { %807 = vrcp.f32 %v534_v49  ;;  %vm555_vm5 = vweird.f32 %v534_v49  ;;  %v561_v59 = vand.u32 2147483648, %v534_v49  ;;  %v544_v61 = vand.u32 2147483647, %v533_v48 }
 0x1dc   : > { %v470_v35 = vadd.f32 %v800_v24, %v469_v33  ;;  %v559_v63 = vand.u32 2147483647, %v534_v49  ;;  %v547_v3 = vor.u32 1.1754944e-38, %v546_v58 }
 0x1dd   : > { %v562_v5 = vor.u32 1.1754944e-38, %v561_v59  ;;  %vm545_vm9 = vcmp.eq.f32.partialorder %v544_v61, 8.507059e+37 }
 0x1de   : > { %v474_v37 = vsel %vm473_vm1, %v800_v24, %v470_v35  ;;  %vm560_vm10 = vcmp.eq.f32.partialorder %v559_v63, 8.507059e+37 }
 0x1df   : > { %v479_v38 = vsel %vm476_vm2, %v478_v36, %v474_v37 }
 0x1e0   : > { %582 = vperm.xlu1 %784, %v479_v38   ;;  %v806_v50 = vpop.eup %805 }
 0x1e1   : > { %v808_v51 = vpop.eup %807  ;;  %v536_v52 = vmul.f32 %v806_v50, %v533_v48  ;;  %vm541_vm4 = vweird.f32 %v806_v50 }
 0x1e2   : > { %v551_v53 = vmul.f32 %v808_v51, %v534_v49  ;;  %vm556_vm6 = vweird.f32 %v808_v51  ;;  %vm542_vm7 = vmor %vm540_vm3, %vm541_vm4 }
 0x1e3   : > { %v537_v54 = vsub.f32 1.0, %v536_v52  ;;  %vm557_vm8 = vmor %vm555_vm5, %vm556_vm6 }
 0x1e4   : > { %v552_v55 = vsub.f32 1.0, %v551_v53 }
 0x1e5   : > { %v538_v56 = vmul.f32 %v806_v50, %v537_v54 }
 0x1e6   : > { %v553_v57 = vmul.f32 %v808_v51, %v552_v55 }
 0x1e7   : > { %v539_v60 = vadd.f32 %v806_v50, %v538_v56 }
 0x1e8   : > { %v554_v62 = vadd.f32 %v808_v51, %v553_v57 }
 0x1e9   : > { %v543_v10 = vsel %vm542_vm7, %v806_v50, %v539_v60 }
 0x1ea   : > { %v558_v11 = vsel %vm557_vm8, %v808_v51, %v554_v62  ;;  %v548_v12 = vsel %vm545_vm9, %v547_v3, %v543_v10 }
 0x1eb   : > { %v563_v13 = vsel %vm560_vm10, %v562_v5, %v558_v11  ;;  %v585_v14 = vperm.slane %v548_v12, 0 }
 0x1ec   : > { %v586_v15 = vperm.slane %v563_v13, 0 }
 0x22a   : > { %v568_v16 = vpop.permute.xlu2 %567 }
 0x22b   : > { %v587_v17 = vadd.f32 %v585_v14, %v568_v16  ;;  %v588_v18 = vadd.f32 %v586_v15, %v568_v16 }
 0x22d   : > { %v595_v19 = vmul.f32 %v587_v17, %v1071_v8  ;;  %v596_v20 = vmul.f32 %v588_v18, %v1073_v9 }
 0x22f   : > { %603 = vst [vmem:[%s299_s21] sm:$0xff] %v595_v19 }
 0x230   : > { %604 = vst [vmem:[%s299_s21 + $0x8] sm:$0xff] %v596_v20 }
 0x232   : > { %v573_v21 = vpop.permute.xlu2 %572 }
 0x233   : > { %v589_v22 = vadd.f32 %v585_v14, %v573_v21  ;;  %v590_v23 = vadd.f32 %v586_v15, %v573_v21 }
 0x235   : > { %v597_v24 = vmul.f32 %v589_v22, %v1055_v2  ;;  %v598_v25 = vmul.f32 %v590_v23, %v1059_v4 }
 0x237   : > { %605 = vst [vmem:[%s299_s21 + $0x10] sm:$0xff] %v597_v24 }
 0x238   : > { %606 = vst [vmem:[%s299_s21 + $0x18] sm:$0xff] %v598_v25 }
 0x24a   : > { %v578_v26 = vpop.permute.xlu0 %577 }
 0x24b   : > { %v591_v27 = vadd.f32 %v585_v14, %v578_v26  ;;  %v592_v28 = vadd.f32 %v586_v15, %v578_v26 }
 0x24d   : > { %v599_v8 = vmul.f32 %v591_v27, %v1065_v6  ;;  %v600_v9 = vmul.f32 %v592_v28, %v1067_v7 }
 0x24f   : > { %607 = vst [vmem:[%s299_s21 + $0x20] sm:$0xff] %v599_v8 }
 0x250   : > { %608 = vst [vmem:[%s299_s21 + $0x28] sm:$0xff] %v600_v9 }
 0x252   : > { %v583_v2 = vpop.permute.xlu1 %582 }
 0x253   : > { %v593_v4 = vadd.f32 %v585_v14, %v583_v2  ;;  %v594_v29 = vadd.f32 %v586_v15, %v583_v2 }
 0x255   : > { %v601_v30 = vmul.f32 %v593_v4, %v1051_v0  ;;  %v602_v31 = vmul.f32 %v594_v29, %v1053_v1 }
 0x257   : > { %609 = vst [vmem:[%s299_s21 + $0x30] sm:$0xff] %v601_v30 }
 0x258   : > { %610 = vst [vmem:[%s299_s21 + $0x38] sm:$0xff] %v602_v31 }
 0x259   : > { %866 = shalt.err (!%p863_p4)
}
 0x25a   : > { %s910_s23 = smov 256   ;;  %s911_s21 = smov 16  }
 0x25b   : > { %733 = dma.vmem_to_hbm [thread:$0]  (%p1005_p11), %s625_s22, 1024, %s627_s24, %s612_s6, %s910_s23, %s910_s23, %s911_s21  }
 0x25c PF: > { %s641_s10 = sand.u32 1, %s893_s26   ;;  %p1172_p7 = scmp.ge.s32.totalorder %s905_s29, 2 }
 0x25d   : > { %s642_s9 = scalar_lea.sflag [#allocation5], %s641_s10 }
 0x25e   : > { %p740_p5 = pnand %p1172_p7, %p1009_p12 }
 0x260   : > { %p741_p8 = pneg %p740_p5 }
 0x262   : > { %888 = dma.done.wait (%p741_p8), %s642_s9, 1024  }
 0x263   : > { %890 = vsyncadd (%p741_p8), %s642_s9, 4294966272  ;;  %p21_p10 = scmp.ge.s32.totalorder %s980_s8, 4   ;;  %s1173_s26 = smov %s897_s27 }
 0x264   : > { %s1174_s27 = smov %s901_s28  ;;  %s1175_s28 = smov %s992_s11 }
 0x265   : > { %s1176_s29 = smov %s980_s8  ;;  %23 = sbr.rel (!%p21_p10) target bundleno = 7 (0x7), region = 93 }
 0x26a   :  { %648 = vsyncpa [#allocation4], 1 }
 0x26b   :  { %650 = vsyncpa [#allocation4 + $0x1], 1 }
 0x26c   :  { %651 = vsyncpa [#allocation5], 1 }
 0x26d   :  { %653 = vsyncpa [#allocation5 + $0x1], 1 }

</bundles_post_ra>
